<compile_context>
chip_gen: v6e
topology: v6e:2x2x1
jax: 0.10.0
libtpu: 0.0.40
codegen_flags: <defaults>
</compile_context>

<pallas_src>
import jax
import jax.numpy as jnp
from jax.experimental import pallas as pl
from jax.experimental.pallas import tpu as pltpu

_VMEM_BUDGET = 40 * 1024 * 1024       # working-set budget used for NB sizing
_VMEM_LIMIT = 48 * 1024 * 1024        # scoped VMEM limit handed to Mosaic


def _pick_batch_chunk(n, n_phase, cin, cout, phw_pad, in_bytes, out_bytes,
                      n_taps, budget_bytes):
    """Largest batch-chunk NB (divisor of N) whose working set fits the VMEM
    budget while keeping >= 2 grid steps (so both v7x TensorCores get work)."""
    def fits(nb):
        lb = nb * phw_pad
        need = (2 * n_phase * cin * lb * in_bytes      # double-buffered input
                + 2 * cout * lb * out_bytes            # double-buffered output
                + cout * lb * 4                        # f32 accumulator values
                + 2 * n_taps * cout * cin * in_bytes   # resident weights (2 bufs)
                + (2 << 20))                           # slack
        return need <= budget_bytes

    best = 1
    for nb in range(1, n + 1):
        if n % nb:
            continue
        if not fits(nb):
            continue
        if n // nb >= 2 or n == 1:
            best = nb
    return best


def conv2d_pallas(x, weight, bias, stride=(1, 1), padding=(0, 0),
                  dilation=(1, 1), groups=1, compute_dtype=jnp.bfloat16):
    """aten.convolution.default forward (transposed=False, output_padding=0)."""
    assert groups == 1, "groups != 1 not implemented for this test case"
    N, Cin, H, W = x.shape
    Cout, Cin_w, KH, KW = weight.shape
    assert Cin_w == Cin
    sh, sw = stride
    ph, pw = padding
    dh, dw = dilation
    OH = (H + 2 * ph - dh * (KH - 1) - 1) // sh + 1
    OW = (W + 2 * pw - dw * (KW - 1) - 1) // sw + 1
    n_taps = KH * KW
    n_phase = sh * sw

    # ---- wrapper glue: pad + stride-phase decomposition (no im2col blowup) ----
    Hp, Wp = H + 2 * ph, W + 2 * pw
    Hp2 = -(-Hp // sh) * sh            # round padded dims up to stride multiple
    Wp2 = -(-Wp // sw) * sw
    x_pad = jnp.pad(x, ((0, 0), (0, 0),
                        (ph, ph + (Hp2 - Hp)), (pw, pw + (Wp2 - Wp))))
    PH, PW = Hp2 // sh, Wp2 // sw
    phw = PH * PW
    phw_pad = max(128, -(-phw // 128) * 128)   # lane-dense per-batch plane

    # (N,Cin,Hp2,Wp2) -> (sh,sw,Cin,N,PH,PW): phase (a,b) holds x_pad[..., a::sh, b::sw]
    x_ph = x_pad.reshape(N, Cin, PH, sh, PW, sw).transpose(3, 5, 1, 0, 2, 4)
    x_ph = x_ph.reshape(n_phase, Cin, N, phw)
    if phw_pad != phw:
        x_ph = jnp.pad(x_ph, ((0, 0), (0, 0), (0, 0), (0, phw_pad - phw)))
    x_ph = x_ph.reshape(n_phase, Cin, N * phw_pad).astype(compute_dtype)

    # weight OIHW -> (taps, Cout, Cin); bias -> (Cout, 1) f32
    w_taps = jnp.transpose(weight, (2, 3, 0, 1)).reshape(n_taps, Cout, Cin)
    w_taps = w_taps.astype(compute_dtype)
    if bias is None:
        bias = jnp.zeros((Cout,), dtype=jnp.float32)
    b_mat = bias.astype(jnp.float32).reshape(Cout, 1)

    # static per-tap metadata: which phase + which (row,col) offset inside it
    taps = []
    for kh in range(KH):
        for kw_ in range(KW):
            rh, rw = kh * dh, kw_ * dw
            taps.append(((rh % sh) * sw + (rw % sw),       # phase index
                         (rh // sh) * PW + (rw // sw)))    # flat lane offset

    in_bytes = jnp.dtype(compute_dtype).itemsize
    out_bytes = jnp.dtype(x.dtype).itemsize
    nb = _pick_batch_chunk(N, n_phase, Cin, Cout, phw_pad, in_bytes, out_bytes,
                           n_taps, _VMEM_BUDGET)
    n_chunks = N // nb
    lb = nb * phw_pad                 # lane width per grid step (multiple of 128)

    def kernel(x_ref, w_ref, b_ref, o_ref):
        # x_ref: (n_phase, Cin, lb) bf16   w_ref: (n_taps, Cout, Cin) bf16
        # b_ref: (Cout, 1) f32             o_ref: (Cout, lb)
        acc = None
        for t, (p_idx, off) in enumerate(taps):      # static unroll over taps
            pt = jnp.dot(w_ref[t], x_ref[p_idx],
                         preferred_element_type=jnp.float32)
            if off:
                # realign tap to the output grid; wrapped lanes only land in
                # padded/discarded positions (proved by PH/PW >= OH/OW + off).
                pt = pltpu.roll(pt, lb - off, axis=1)
            acc = pt if acc is None else acc + pt
        o_ref[...] = (acc + b_ref[...]).astype(o_ref.dtype)

    out_flat = pl.pallas_call(
        kernel,
        out_shape=jax.ShapeDtypeStruct((n_chunks, Cout, lb), x.dtype),
        grid_spec=pltpu.PrefetchScalarGridSpec(
            num_scalar_prefetch=0,
            grid=(n_chunks,),
            in_specs=[
                pl.BlockSpec((n_phase, Cin, lb), lambda i: (0, 0, i)),
                pl.BlockSpec((n_taps, Cout, Cin), lambda i: (0, 0, 0)),
                pl.BlockSpec((Cout, 1), lambda i: (0, 0)),
            ],
            out_specs=pl.BlockSpec((None, Cout, lb), lambda i: (i, 0, 0)),
        ),
        compiler_params=pltpu.CompilerParams(
            dimension_semantics=("parallel",),
            vmem_limit_bytes=_VMEM_LIMIT,
        ),
        cost_estimate=pl.CostEstimate(
            flops=2 * N * Cout * Cin * KH * KW * OH * OW,
            bytes_accessed=(x_ph.size * in_bytes
                            + w_taps.size * in_bytes
                            + N * Cout * OH * OW * out_bytes),
            transcendentals=0,
        ),
    )(x_ph, w_taps, b_mat)

    # (n_chunks, Cout, nb*phw_pad) -> NCHW; padded rows/cols are discarded
    out = out_flat.reshape(n_chunks, Cout, nb, phw_pad).transpose(0, 2, 1, 3)
    out = out.reshape(N, Cout, phw_pad)[:, :, :phw]
    out = out.reshape(N, Cout, PH, PW)[:, :, :OH, :OW]
    return out


if __name__ == "__main__":
    key = jax.random.PRNGKey(0)
    kx, kw_key, kb = jax.random.split(key, 3)

    # Small MobileNetSSD-style conv: 3x3, stride 2, pad 1, dilation 1, groups 1
    N, Cin, H, W = 2, 4, 16, 16
    Cout, KH, KW = 8, 3, 3
    stride, padding, dilation = (2, 2), (1, 1), (1, 1)

    x = jax.random.normal(kx, (N, Cin, H, W), dtype=jnp.float32)
    weight = jax.random.normal(kw_key, (Cout, Cin, KH, KW), dtype=jnp.float32) * 0.1
    bias = jax.random.normal(kb, (Cout,), dtype=jnp.float32) * 0.1

    out = conv2d_pallas(x, weight, bias, stride, padding, dilation, groups=1)
    out = jax.block_until_ready(out)

    # reference with the same bf16 operand / f32 accumulation numerics
    ref = jax.lax.conv_general_dilated(
        x.astype(jnp.bfloat16), weight.astype(jnp.bfloat16),
        window_strides=stride,
        padding=[(padding[0], padding[0]), (padding[1], padding[1])],
        rhs_dilation=dilation,
        dimension_numbers=("NCHW", "OIHW", "NCHW"),
        preferred_element_type=jnp.float32,
    ) + bias.reshape(1, Cout, 1, 1)

    assert out.shape == (N, Cout, H // 2, W // 2)
    assert out.dtype == x.dtype
    assert jnp.allclose(out, ref, atol=2e-2, rtol=2e-2)

    print("KERNEL_OK")
</pallas_src>

<mosaic_0001>
module attributes {stable_mosaic.version = 11 : i64} {
  func.func @kernel(%arg0: i32, %arg1: memref<4x4x128xbf16, #tpu.memory_space<vmem>>, %arg2: memref<9x8x4xbf16, #tpu.memory_space<vmem>>, %arg3: memref<8x1xf32, #tpu.memory_space<vmem>>, %arg4: memref<1x8x128xf32, #tpu.memory_space<vmem>>) attributes {dimension_semantics = [#tpu.dimension_semantics<parallel>], iteration_bounds = array<i64: 2>, scalar_prefetch = 0 : i64, scratch_operands = 0 : i64, tpu.core_type = #tpu.core_type<tc>, window_params = [{transform_indices = @transform_0, window_bounds = array<i64: 4, 4, 128>}, {pipeline_mode = #tpu.pipeline_mode<synchronous>, transform_indices = @transform_1, window_bounds = array<i64: 9, 8, 4>}, {pipeline_mode = #tpu.pipeline_mode<synchronous>, transform_indices = @transform_2, window_bounds = array<i64: 8, 1>}, {transform_indices = @transform_3, window_bounds = array<i64: 1, 8, 128>}]} {
    %c0 = arith.constant 0 : index
    %c0_0 = arith.constant 0 : index
    %c0_1 = arith.constant 0 : index
    %0 = vector.load %arg2[%c0, %c0_0, %c0_1] : memref<9x8x4xbf16, #tpu.memory_space<vmem>>, vector<1x8x4xbf16>
    %1 = vector.shape_cast %0 : vector<1x8x4xbf16> to vector<8x4xbf16>
    %c0_2 = arith.constant 0 : index
    %c0_3 = arith.constant 0 : index
    %c0_4 = arith.constant 0 : index
    %2 = vector.load %arg1[%c0_2, %c0_3, %c0_4] : memref<4x4x128xbf16, #tpu.memory_space<vmem>>, vector<1x4x128xbf16>
    %3 = vector.shape_cast %2 : vector<1x4x128xbf16> to vector<4x128xbf16>
    %cst = arith.constant dense<0.000000e+00> : vector<8x128xf32>
    %4 = tpu.matmul %1, %3, %cst {dimension_numbers = #tpu.dot_dimension_numbers<[1], [0], [0], [1], [0, 0, 1, 1], [], []>} : vector<8x4xbf16>, vector<4x128xbf16>, vector<8x128xf32> -> vector<8x128xf32>
    %c1 = arith.constant 1 : index
    %c0_5 = arith.constant 0 : index
    %c0_6 = arith.constant 0 : index
    %5 = vector.load %arg2[%c1, %c0_5, %c0_6] : memref<9x8x4xbf16, #tpu.memory_space<vmem>>, vector<1x8x4xbf16>
    %6 = vector.shape_cast %5 : vector<1x8x4xbf16> to vector<8x4xbf16>
    %c1_7 = arith.constant 1 : index
    %c0_8 = arith.constant 0 : index
    %c0_9 = arith.constant 0 : index
    %7 = vector.load %arg1[%c1_7, %c0_8, %c0_9] : memref<4x4x128xbf16, #tpu.memory_space<vmem>>, vector<1x4x128xbf16>
    %8 = vector.shape_cast %7 : vector<1x4x128xbf16> to vector<4x128xbf16>
    %cst_10 = arith.constant dense<0.000000e+00> : vector<8x128xf32>
    %9 = tpu.matmul %6, %8, %cst_10 {dimension_numbers = #tpu.dot_dimension_numbers<[1], [0], [0], [1], [0, 0, 1, 1], [], []>} : vector<8x4xbf16>, vector<4x128xbf16>, vector<8x128xf32> -> vector<8x128xf32>
    %10 = arith.addf %4, %9 : vector<8x128xf32>
    %c2 = arith.constant 2 : index
    %c0_11 = arith.constant 0 : index
    %c0_12 = arith.constant 0 : index
    %11 = vector.load %arg2[%c2, %c0_11, %c0_12] : memref<9x8x4xbf16, #tpu.memory_space<vmem>>, vector<1x8x4xbf16>
    %12 = vector.shape_cast %11 : vector<1x8x4xbf16> to vector<8x4xbf16>
    %c0_13 = arith.constant 0 : index
    %c0_14 = arith.constant 0 : index
    %c0_15 = arith.constant 0 : index
    %13 = vector.load %arg1[%c0_13, %c0_14, %c0_15] : memref<4x4x128xbf16, #tpu.memory_space<vmem>>, vector<1x4x128xbf16>
    %14 = vector.shape_cast %13 : vector<1x4x128xbf16> to vector<4x128xbf16>
    %cst_16 = arith.constant dense<0.000000e+00> : vector<8x128xf32>
    %15 = tpu.matmul %12, %14, %cst_16 {dimension_numbers = #tpu.dot_dimension_numbers<[1], [0], [0], [1], [0, 0, 1, 1], [], []>} : vector<8x4xbf16>, vector<4x128xbf16>, vector<8x128xf32> -> vector<8x128xf32>
    %c127_i32 = arith.constant 127 : i32
    %16 = tpu.dynamic_rotate %15 by %c127_i32 dim 1 : vector<8x128xf32>, i32 -> vector<8x128xf32>
    %17 = arith.addf %10, %16 : vector<8x128xf32>
    %c3 = arith.constant 3 : index
    %c0_17 = arith.constant 0 : index
    %c0_18 = arith.constant 0 : index
    %18 = vector.load %arg2[%c3, %c0_17, %c0_18] : memref<9x8x4xbf16, #tpu.memory_space<vmem>>, vector<1x8x4xbf16>
    %19 = vector.shape_cast %18 : vector<1x8x4xbf16> to vector<8x4xbf16>
    %c2_19 = arith.constant 2 : index
    %c0_20 = arith.constant 0 : index
    %c0_21 = arith.constant 0 : index
    %20 = vector.load %arg1[%c2_19, %c0_20, %c0_21] : memref<4x4x128xbf16, #tpu.memory_space<vmem>>, vector<1x4x128xbf16>
    %21 = vector.shape_cast %20 : vector<1x4x128xbf16> to vector<4x128xbf16>
    %cst_22 = arith.constant dense<0.000000e+00> : vector<8x128xf32>
    %22 = tpu.matmul %19, %21, %cst_22 {dimension_numbers = #tpu.dot_dimension_numbers<[1], [0], [0], [1], [0, 0, 1, 1], [], []>} : vector<8x4xbf16>, vector<4x128xbf16>, vector<8x128xf32> -> vector<8x128xf32>
    %23 = arith.addf %17, %22 : vector<8x128xf32>
    %c4 = arith.constant 4 : index
    %c0_23 = arith.constant 0 : index
    %c0_24 = arith.constant 0 : index
    %24 = vector.load %arg2[%c4, %c0_23, %c0_24] : memref<9x8x4xbf16, #tpu.memory_space<vmem>>, vector<1x8x4xbf16>
    %25 = vector.shape_cast %24 : vector<1x8x4xbf16> to vector<8x4xbf16>
    %c3_25 = arith.constant 3 : index
    %c0_26 = arith.constant 0 : index
    %c0_27 = arith.constant 0 : index
    %26 = vector.load %arg1[%c3_25, %c0_26, %c0_27] : memref<4x4x128xbf16, #tpu.memory_space<vmem>>, vector<1x4x128xbf16>
    %27 = vector.shape_cast %26 : vector<1x4x128xbf16> to vector<4x128xbf16>
    %cst_28 = arith.constant dense<0.000000e+00> : vector<8x128xf32>
    %28 = tpu.matmul %25, %27, %cst_28 {dimension_numbers = #tpu.dot_dimension_numbers<[1], [0], [0], [1], [0, 0, 1, 1], [], []>} : vector<8x4xbf16>, vector<4x128xbf16>, vector<8x128xf32> -> vector<8x128xf32>
    %29 = arith.addf %23, %28 : vector<8x128xf32>
    %c5 = arith.constant 5 : index
    %c0_29 = arith.constant 0 : index
    %c0_30 = arith.constant 0 : index
    %30 = vector.load %arg2[%c5, %c0_29, %c0_30] : memref<9x8x4xbf16, #tpu.memory_space<vmem>>, vector<1x8x4xbf16>
    %31 = vector.shape_cast %30 : vector<1x8x4xbf16> to vector<8x4xbf16>
    %c2_31 = arith.constant 2 : index
    %c0_32 = arith.constant 0 : index
    %c0_33 = arith.constant 0 : index
    %32 = vector.load %arg1[%c2_31, %c0_32, %c0_33] : memref<4x4x128xbf16, #tpu.memory_space<vmem>>, vector<1x4x128xbf16>
    %33 = vector.shape_cast %32 : vector<1x4x128xbf16> to vector<4x128xbf16>
    %cst_34 = arith.constant dense<0.000000e+00> : vector<8x128xf32>
    %34 = tpu.matmul %31, %33, %cst_34 {dimension_numbers = #tpu.dot_dimension_numbers<[1], [0], [0], [1], [0, 0, 1, 1], [], []>} : vector<8x4xbf16>, vector<4x128xbf16>, vector<8x128xf32> -> vector<8x128xf32>
    %c127_i32_35 = arith.constant 127 : i32
    %35 = tpu.dynamic_rotate %34 by %c127_i32_35 dim 1 : vector<8x128xf32>, i32 -> vector<8x128xf32>
    %36 = arith.addf %29, %35 : vector<8x128xf32>
    %c6 = arith.constant 6 : index
    %c0_36 = arith.constant 0 : index
    %c0_37 = arith.constant 0 : index
    %37 = vector.load %arg2[%c6, %c0_36, %c0_37] : memref<9x8x4xbf16, #tpu.memory_space<vmem>>, vector<1x8x4xbf16>
    %38 = vector.shape_cast %37 : vector<1x8x4xbf16> to vector<8x4xbf16>
    %c0_38 = arith.constant 0 : index
    %c0_39 = arith.constant 0 : index
    %c0_40 = arith.constant 0 : index
    %39 = vector.load %arg1[%c0_38, %c0_39, %c0_40] : memref<4x4x128xbf16, #tpu.memory_space<vmem>>, vector<1x4x128xbf16>
    %40 = vector.shape_cast %39 : vector<1x4x128xbf16> to vector<4x128xbf16>
    %cst_41 = arith.constant dense<0.000000e+00> : vector<8x128xf32>
    %41 = tpu.matmul %38, %40, %cst_41 {dimension_numbers = #tpu.dot_dimension_numbers<[1], [0], [0], [1], [0, 0, 1, 1], [], []>} : vector<8x4xbf16>, vector<4x128xbf16>, vector<8x128xf32> -> vector<8x128xf32>
    %c119_i32 = arith.constant 119 : i32
    %42 = tpu.dynamic_rotate %41 by %c119_i32 dim 1 : vector<8x128xf32>, i32 -> vector<8x128xf32>
    %43 = arith.addf %36, %42 : vector<8x128xf32>
    %c7 = arith.constant 7 : index
    %c0_42 = arith.constant 0 : index
    %c0_43 = arith.constant 0 : index
    %44 = vector.load %arg2[%c7, %c0_42, %c0_43] : memref<9x8x4xbf16, #tpu.memory_space<vmem>>, vector<1x8x4xbf16>
    %45 = vector.shape_cast %44 : vector<1x8x4xbf16> to vector<8x4xbf16>
    %c1_44 = arith.constant 1 : index
    %c0_45 = arith.constant 0 : index
    %c0_46 = arith.constant 0 : index
    %46 = vector.load %arg1[%c1_44, %c0_45, %c0_46] : memref<4x4x128xbf16, #tpu.memory_space<vmem>>, vector<1x4x128xbf16>
    %47 = vector.shape_cast %46 : vector<1x4x128xbf16> to vector<4x128xbf16>
    %cst_47 = arith.constant dense<0.000000e+00> : vector<8x128xf32>
    %48 = tpu.matmul %45, %47, %cst_47 {dimension_numbers = #tpu.dot_dimension_numbers<[1], [0], [0], [1], [0, 0, 1, 1], [], []>} : vector<8x4xbf16>, vector<4x128xbf16>, vector<8x128xf32> -> vector<8x128xf32>
    %c119_i32_48 = arith.constant 119 : i32
    %49 = tpu.dynamic_rotate %48 by %c119_i32_48 dim 1 : vector<8x128xf32>, i32 -> vector<8x128xf32>
    %50 = arith.addf %43, %49 : vector<8x128xf32>
    %c8 = arith.constant 8 : index
    %c0_49 = arith.constant 0 : index
    %c0_50 = arith.constant 0 : index
    %51 = vector.load %arg2[%c8, %c0_49, %c0_50] : memref<9x8x4xbf16, #tpu.memory_space<vmem>>, vector<1x8x4xbf16>
    %52 = vector.shape_cast %51 : vector<1x8x4xbf16> to vector<8x4xbf16>
    %c0_51 = arith.constant 0 : index
    %c0_52 = arith.constant 0 : index
    %c0_53 = arith.constant 0 : index
    %53 = vector.load %arg1[%c0_51, %c0_52, %c0_53] : memref<4x4x128xbf16, #tpu.memory_space<vmem>>, vector<1x4x128xbf16>
    %54 = vector.shape_cast %53 : vector<1x4x128xbf16> to vector<4x128xbf16>
    %cst_54 = arith.constant dense<0.000000e+00> : vector<8x128xf32>
    %55 = tpu.matmul %52, %54, %cst_54 {dimension_numbers = #tpu.dot_dimension_numbers<[1], [0], [0], [1], [0, 0, 1, 1], [], []>} : vector<8x4xbf16>, vector<4x128xbf16>, vector<8x128xf32> -> vector<8x128xf32>
    %c118_i32 = arith.constant 118 : i32
    %56 = tpu.dynamic_rotate %55 by %c118_i32 dim 1 : vector<8x128xf32>, i32 -> vector<8x128xf32>
    %57 = arith.addf %50, %56 : vector<8x128xf32>
    %c0_55 = arith.constant 0 : index
    %c0_56 = arith.constant 0 : index
    %58 = vector.load %arg3[%c0_55, %c0_56] : memref<8x1xf32, #tpu.memory_space<vmem>>, vector<8x1xf32>
    %59 = vector.broadcast %58 : vector<8x1xf32> to vector<8x128xf32>
    %60 = arith.addf %57, %59 : vector<8x128xf32>
    %c0_57 = arith.constant 0 : index
    %c0_58 = arith.constant 0 : index
    %c0_59 = arith.constant 0 : index
    %61 = vector.load %arg4[%c0_57, %c0_58, %c0_59] : memref<1x8x128xf32, #tpu.memory_space<vmem>>, vector<1x8x128xf32>
    %62 = vector.shape_cast %61 : vector<1x8x128xf32> to vector<8x128xf32>
    %63 = vector.shape_cast %60 : vector<8x128xf32> to vector<1x8x128xf32>
    tpu.vector_store %arg4[%c0_57, %c0_58, %c0_59], %63 {strides = array<i32>} : memref<1x8x128xf32, #tpu.memory_space<vmem>>, vector<1x8x128xf32>,
    return
  }
  func.func @transform_0(%arg0: i32) -> (i32, i32, i32) {
    %c0_i32 = arith.constant 0 : i32
    %c0_i32_0 = arith.constant 0 : i32
    %c0_i32_1 = arith.constant 0 : i32
    return %c0_i32, %c0_i32_0, %arg0 : i32, i32, i32
  }
  func.func @transform_1(%arg0: i32) -> (i32, i32, i32) {
    %c0_i32 = arith.constant 0 : i32
    %c0_i32_0 = arith.constant 0 : i32
    %c0_i32_1 = arith.constant 0 : i32
    %c0_i32_2 = arith.constant 0 : i32
    return %c0_i32, %c0_i32_0, %c0_i32_1 : i32, i32, i32
  }
  func.func @transform_2(%arg0: i32) -> (i32, i32) {
    %c0_i32 = arith.constant 0 : i32
    %c0_i32_0 = arith.constant 0 : i32
    %c0_i32_1 = arith.constant 0 : i32
    return %c0_i32, %c0_i32_0 : i32, i32
  }
  func.func @transform_3(%arg0: i32) -> (i32, i32, i32) {
    %c0_i32 = arith.constant 0 : i32
    %c0_i32_0 = arith.constant 0 : i32
    %c0_i32_1 = arith.constant 0 : i32
    return %arg0, %c0_i32, %c0_i32_0 : i32, i32, i32
  }
}

</mosaic_0001>

<bundles_post_ra>
// kernel: tpu_custom_call.1
= control target key start
LH: loop header
LB: loop body
LE: loop exit
PB: predicated region body
PF: predicated region fallthrough
CT: control target
= control target key end

     0   :  { %8 = vsyncpa [#allocation4], 0  ;;  %s1146_s0 = inlined_call_operand.vmem [shape: bf16[4,4,256], index: 0, kind: input, shape index: {}]   ;;  %s1147_s1 = inlined_call_operand.vmem [shape: bf16[9,8,4], index: 1, kind: input, shape index: {}]   ;;  %s1148_s2 = inlined_call_operand.vmem [shape: f32[8,1], index: 2, kind: input, shape index: {}]   ;;  %s1149_s3 = inlined_call_operand.hbm [shape: f32[2,8,128], index: 3, kind: output, shape index: {}]  }
   0x1   :  { %10 = vsyncpa [#allocation4 + $0x1], 0  ;;  %s994_s12 = smov 0   ;;  %s996_s13 = smov 0  }
   0x2   :  { %s998_s14 = smov 0   ;;  %s1000_s15 = smov 0  }
   0x3 LB: > { %s753_s16 = sadd.s32 4294967295, %s965_s15   ;;  %s754_s17 = sadd.s32 4294967294, %s965_s15   ;;  %s965_s15 = sphi %s1000_s15, %s1157_s15   ;;  %s961_s14 = sphi %s998_s14, %s1156_s14   ;;  %s957_s13 = sphi %s996_s13, %s1155_s13   ;;  %s953_s12 = sphi %s994_s12, %s1154_s12  }
   0x4   : > { %s1017_s18 = sadd.s32 1, %s965_s15   ;;  %s23_s19 = sadd.s32 1, %s961_s14 }
   0x5   : > { %s20_s20 = ssub.s32 %s965_s15, %s1017_s18  ;;  %p30_p0 = scmp.ne.s32.totalorder %s961_s14, %s957_s13 }
   0x6   : > { %p21_p1 = scmp.eq.s32.totalorder %s20_s20, 0  ;;  %p31_p2 = scmp.eq.s32.totalorder %s965_s15, 0 }
   0x7   : > { %p102_p3 = scmp.eq.s32.totalorder %s753_s16, 1  ;;  %p107_p4 = scmp.ne.s32.totalorder %s957_s13, %s953_s12 }
   0x8   : > { %s1030_s21 = scalar_select %p21_p1, %s961_s14, %s23_s19  }
   0x9   : > { %p32_p5 = por %p31_p2, %p30_p0  ;;  %p1032_p6 = por %p102_p3, %p30_p0 }
   0xa   : > { %p108_p7 = scmp.eq.s32.totalorder %s754_s17, 1  ;;  %p1150_p9 = scmp.ge.s32.totalorder %s965_s15, 2 }
   0xc   : > { %p1036_p8 = por %p108_p7, %p107_p4  ;;  %130 = sbr.rel (%p1150_p9) target bundleno = 23 (0x17), region = 24 }
  0x11   : > { %133 = sbr.rel (!%p32_p5) target bundleno = 23 (0x17), region = 28  ;;  %s135_s24 = sand.u32 (%p32_p5), 1, %s961_s14  }
  0x12   : > { %s758_s25 = sshll.u32 (%p32_p5), %s965_s15, 1  ;;  %s757_s26 = sshll.u32 (%p32_p5), %s135_s24, 3 }
  0x13   : > { %s139_s29 = scalar_lea.vmem (%p32_p5), %s1146_s0, %s758_s25  ;;  %s137_s30 = scalar_lea.vmem (%p32_p5), [#allocation2], %s757_s26 }
  0x14   : > { %v156_v0 = vld [vmem:[%s139_s29] sm:$0x3] (%p32_p5)  ;;  %v158_v1 = vld [vmem:[%s139_s29 + $0x4] sm:$0x3] (%p32_p5)  ;;  %v160_v2 = vld [vmem:[%s139_s29 + $0x8] sm:$0x3] (%p32_p5) }
  0x15   : > { %157 = vst [vmem:[%s137_s30] sm:$0x3] (%p32_p5), %v156_v0  ;;  %159 = vst [vmem:[%s137_s30 + $0x2] sm:$0x3] (%p32_p5), %v158_v1  ;;  %v162_v3 = vld [vmem:[%s139_s29 + $0xc] sm:$0x3] (%p32_p5) }
  0x16   : > { %161 = vst [vmem:[%s137_s30 + $0x4] sm:$0x3] %v160_v2  ;;  %163 = vst [vmem:[%s137_s30 + $0x6] sm:$0x3] %v162_v3 }
  0x17 PF: > { %p759_p10 = scmp.ge.s32.totalorder %s965_s15, 1  ;;  %p194_p11 = scmp.lt.s32.totalorder %s965_s15, 3 }
  0x19   : > { %p195_p12 = pnand %p759_p10, %p194_p11 }
  0x1a   : > { %s201_s4 = sand.u32 (!%p195_p12), 1, %s957_s13   ;;  %s970_s11 = smov (!%p195_p12), 127  }
  0x1b   : > { %198 = sbr.rel (%p195_p12) target bundleno = 395 (0x18b), region = 69  ;;  %s1053_s5 = sshll.u32 (!%p195_p12), %s201_s4, 3 }
  0x1c   : > { %s203_s6 = scalar_lea.vmem (!%p195_p12), [#allocation2], %s1053_s5  ;;  %s971_s17 = smov (!%p195_p12), 119  }
  0x1d   : > { %s972_s19 = smov (!%p195_p12), 118   ;;  %s783_s20 = sshll.u32 (!%p195_p12), %s753_s16, 7 }
  0x1e   : > { %s223_s24 = scalar_lea.vmem (!%p195_p12), [#allocation3], %s1053_s5  ;;  %s687_s28 = scalar_lea.hbm (!%p195_p12), %s1149_s3, %s783_s20 }
  0x1f   : > { %s689_s25 = sshll.u32 (!%p195_p12), %s223_s24, 4  ;;  %s676_s29 = scalar_lea.sflag (!%p195_p12), [#allocation4], %s201_s4  ;;  %s690_s25 = int_to_ptr.vmem [resolvable:$true] %s689_s25 }
  0x20   : > { %v967_v4 = vmov 0.0   ;;  %vm235_vm0 = vcmask 1041408   ;;  %vm968_vm1 = vmmov 0   ;;  %v763_v5 = vld [vmem:[%s203_s6 + $0x2] sm:$0x3]  ;;  %vm231_vm2 = vcmask 31744  }
  0x21   : > { %804 = vmatprep.subr.bf16.mxu0 %v967_v4  ;;  %810 = vmatprep.subr.bf16.mxu1 %v967_v4  ;;  %v226_v6 = vld [vmem:[%s203_s6] sm:$0x3]  ;;  %v769_v7 = vld [vmem:[%s203_s6 + $0x4] sm:$0x3]  ;;  %v237_v8 = vsel %vm235_vm0, %v763_v5, 0  ;;  %v969_v23 = vmov 0  }
  0x22   : > { %806 = vmatprep.mubr.msk.bf16.mxu0 %vm968_vm1, %v967_v4  ;;  %812 = vmatprep.mubr.msk.bf16.mxu1 %vm968_vm1, %v967_v4  ;;  %v283_v9 = vsel %vm235_vm0, %v226_v6, 0  ;;  %v762_v10 = vld [vmem:[%s1147_s1 + $0x4] sm:$0xf]  ;;  %v225_v11 = vld [vmem:[%s1147_s1] sm:$0xf]  ;;  %v381_v12 = vsel %vm235_vm0, %v769_v7, 0 }
  0x23   : > { %805 = vmatpush3.bf16.msra.mxu0 %v237_v8  ;;  %811 = vmatpush3.bf16.msra.mxu1 %v283_v9  ;;  %v772_v13 = vld [vmem:[%s203_s6 + $0x6] sm:$0x3]  ;;  %v766_v14 = vld [vmem:[%s1147_s1 + $0x8] sm:$0xf]  ;;  %v771_v17 = vld [vmem:[%s1147_s1 + $0x10] sm:$0xf] }
  0x24   : > { %816 = vmatprep.subr.bf16.mxu0 %v967_v4  ;;  %822 = vmatprep.subr.bf16.mxu1 %v967_v4  ;;  %v768_v15 = vld [vmem:[%s1147_s1 + $0xc] sm:$0xf]  ;;  %v432_v16 = vsel %vm235_vm0, %v772_v13, 0  ;;  %v774_v18 = vld [vmem:[%s1147_s1 + $0x14] sm:$0xf]  ;;  %v667_v22 = vld [vmem:[%s1148_s2] sm:$0xff] }
  0x25   : > { %v776_v19 = vld [vmem:[%s1147_s1 + $0x18] sm:$0xf]  ;;  %v778_v20 = vld [vmem:[%s1147_s1 + $0x1c] sm:$0xf]  ;;  %v780_v21 = vld [vmem:[%s1147_s1 + $0x20] sm:$0xf]  ;;  %903 = vset.pattern.permute.xlu1 %v969_v23  ;;  %904 = vset.pattern.permute.xlu0 %v969_v23 }
  0x26   : > { %807 = vmatmul.mubr.msk.bf16.vlgmr.msra.gmra.mxu0 %vm231_vm2, %v762_v10  ;;  %813 = vmatmul.mubr.msk.bf16.vlgmr.msra.gmra.mxu1 %vm231_vm2, %v225_v11  ;;  %s905_s30 = scalar_lea.vmem %s690_s25, 128  ;;  %s973_s6 = smov [#allocation3]  }
  0x27   : > { %817 = vmatpush3.bf16.msra.mxu0 %v283_v9  ;;  %823 = vmatpush3.bf16.msra.mxu1 %v381_v12  ;;  %p906_p13 = scmp.ne.s32.totalorder %s690_s25, %s905_s30  ;;  %s909_s7 = sshll.u32 %s973_s6, 4  ;;  %s910_s7 = int_to_ptr.vmem [resolvable:$false] %s909_s7 }
  0x28   : > { %818 = vmatprep.mubr.msk.bf16.mxu0 %vm968_vm1, %v967_v4  ;;  %824 = vmatprep.mubr.msk.bf16.mxu1 %vm968_vm1, %v967_v4  ;;  %s911_s16 = scalar_lea.vmem %s910_s7, 256  ;;  %p912_p2 = scmp.lt.s32.totalorder %s690_s25, %s910_s7 }
  0x29   : > { %828 = vmatprep.subr.bf16.mxu0 %v967_v4  ;;  %834 = vmatprep.subr.bf16.mxu1 %v967_v4  ;;  %p907_p0 = pnand %p906_p13, %p1032_p6  ;;  %p913_p3 = scmp.lt.s32.totalorder %s911_s16, %s905_s30 }
  0x2a   : > { %670 = vperm.xlu1 %903, %v667_v22  }
  0x2b   : > { %p908_p1 = pneg %p907_p0  ;;  %p914_p4 = por %p913_p3, %p912_p2 }
  0x2d   : > { %p915_p5 = pnand %p914_p4, %p908_p1 }
  0x2e   : > { %819 = vmatmul.mubr.msk.bf16.vlgmr.msra.gmra.mxu0 %vm231_vm2, %v766_v14  ;;  %825 = vmatmul.mubr.msk.bf16.vlgmr.msra.gmra.mxu1 %vm231_vm2, %v768_v15 }
  0x2f   : > { %829 = vmatpush3.bf16.msra.mxu0 %v432_v16  ;;  %835 = vmatpush3.bf16.msra.mxu1 %v381_v12 }
  0x30   : > { %830 = vmatprep.mubr.msk.bf16.mxu0 %vm968_vm1, %v967_v4  ;;  %836 = vmatprep.mubr.msk.bf16.mxu1 %vm968_vm1, %v967_v4 }
  0x31   : > { %840 = vmatprep.subr.bf16.mxu0 %v967_v4  ;;  %846 = vmatprep.subr.bf16.mxu1 %v967_v4 }
  0x36   : > { %831 = vmatmul.mubr.msk.bf16.vlgmr.msra.gmra.mxu0 %vm231_vm2, %v771_v17  ;;  %837 = vmatmul.mubr.msk.bf16.vlgmr.msra.gmra.mxu1 %vm231_vm2, %v774_v18 }
  0x37   : > { %841 = vmatpush3.bf16.msra.mxu0 %v283_v9  ;;  %847 = vmatpush3.bf16.msra.mxu1 %v237_v8 }
  0x38   : > { %842 = vmatprep.mubr.msk.bf16.mxu0 %vm968_vm1, %v967_v4  ;;  %848 = vmatprep.mubr.msk.bf16.mxu1 %vm968_vm1, %v967_v4 }
  0x39   : > { %852 = vmatprep.subr.bf16.mxu0 %v967_v4 }
  0x3e   : > { %843 = vmatmul.mubr.msk.bf16.vlgmr.msra.gmra.mxu0 %vm231_vm2, %v776_v19  ;;  %849 = vmatmul.mubr.msk.bf16.vlgmr.msra.gmra.mxu1 %vm231_vm2, %v778_v20 }
  0x3f   : > { %853 = vmatpush3.bf16.msra.mxu0 %v283_v9  ;;  %854 = vmatprep.mubr.msk.bf16.mxu0 %vm968_vm1, %v967_v4 }
  0x46   : > { %855 = vmatmul.mubr.msk.bf16.vlgmr.msra.gmra.mxu0 %vm231_vm2, %v780_v21 }
  0xa5   : > { %v671_v63 = vpop.permute.xlu1 %670 }
  0xe6   : > { %v273_v24 = vpop.f32.mrf.mxu0  ;;  %v319_v25 = vpop.f32.mrf.mxu1 }
  0xe7   : > { %v320_v26 = vadd.f32 %v319_v25, %v273_v24 }
  0xe8   : > { %v808_v27 = vpop.f32.mrf.mxu0  ;;  %v814_v28 = vpop.f32.mrf.mxu1 }
  0xea   : > { %v276_v29 = vpop.f32.mrf.mxu0  ;;  %v322_v30 = vpop.f32.mrf.mxu1 }
  0xec   : > { %v809_v31 = vpop.f32.mrf.mxu0  ;;  %v815_v32 = vpop.f32.mrf.mxu1 }
  0xee   : > { %v364_v33 = vpop.f32.mrf.mxu0  ;;  %v417_v34 = vpop.f32.mrf.mxu1 }
  0xef   : > { %370 = vrot.lane.b32.xlu0 %v364_v33, %s970_s11 }
  0xf0   : > { %v820_v35 = vpop.f32.mrf.mxu0  ;;  %v826_v36 = vpop.f32.mrf.mxu1 }
  0xf2   : > { %v367_v37 = vpop.f32.mrf.mxu0  ;;  %v420_v38 = vpop.f32.mrf.mxu1 }
  0xf4   : > { %v821_v39 = vpop.f32.mrf.mxu0  ;;  %v827_v40 = vpop.f32.mrf.mxu1 }
  0xf6   : > { %v468_v41 = vpop.f32.mrf.mxu0  ;;  %v514_v42 = vpop.f32.mrf.mxu1 }
  0xf7   : > { %520 = vrot.lane.b32.xlu0 %v514_v42, %s970_s11 }
  0xf8   : > { %v832_v43 = vpop.f32.mrf.mxu0  ;;  %v838_v44 = vpop.f32.mrf.mxu1 }
  0xfa   : > { %v471_v45 = vpop.f32.mrf.mxu0  ;;  %v517_v46 = vpop.f32.mrf.mxu1 }
  0xfc   : > { %v833_v47 = vpop.f32.mrf.mxu0  ;;  %v839_v48 = vpop.f32.mrf.mxu1 }
  0xfe   : > { %v562_v49 = vpop.f32.mrf.mxu0  ;;  %v610_v50 = vpop.f32.mrf.mxu1 }
  0xff   : > { %568 = vrot.lane.b32.xlu1 %v562_v49, %s971_s17  ;;  %616 = vrot.lane.b32.xlu0 %v610_v50, %s971_s17 }
 0x100   : > { %v844_v51 = vpop.f32.mrf.mxu0  ;;  %v850_v52 = vpop.f32.mrf.mxu1 }
 0x102   : > { %v565_v53 = vpop.f32.mrf.mxu0  ;;  %v613_v54 = vpop.f32.mrf.mxu1 }
 0x104   : > { %v845_v55 = vpop.f32.mrf.mxu0  ;;  %v851_v56 = vpop.f32.mrf.mxu1 }
 0x106   : > { %v658_v57 = vpop.f32.mrf.mxu0 }
 0x107   : > { %664 = vrot.lane.b32.xlu1 %v658_v57, %s972_s19 }
 0x108   : > { %v856_v58 = vpop.f32.mrf.mxu0 }
 0x10a   : > { %v661_v59 = vpop.f32.mrf.mxu0 }
 0x10c   : > { %v857_v60 = vpop.f32.mrf.mxu0 }
 0x161   : > { %v371_v61 = vpop.permute.xlu0 %370 }
 0x162   : > { %v372_v62 = vadd.f32 %v371_v61, %v320_v26 }
 0x164   : > { %v423_v0 = vadd.f32 %v417_v34, %v372_v62 }
 0x166   : > { %v474_v2 = vadd.f32 %v468_v41, %v423_v0 }
 0x169   : > { %v521_v1 = vpop.permute.xlu0 %520 }
 0x16a   : > { %v522_v4 = vadd.f32 %v521_v1, %v474_v2 }
 0x171   : > { %v569_v3 = vpop.permute.xlu1 %568  ;;  %v617_v6 = vpop.permute.xlu0 %616 }
 0x172   : > { %v570_v5 = vadd.f32 %v569_v3, %v522_v4 }
 0x174   : > { %v618_v7 = vadd.f32 %v617_v6, %v570_v5 }
 0x179   : > { %v665_v8 = vpop.permute.xlu1 %664 }
 0x17a   : > { %v666_v9 = vadd.f32 %v665_v8, %v618_v7 }
 0x17c   : > { %v673_v10 = vadd.f32 %v671_v63, %v666_v9 }
 0x17e   : > { %674 = vst [vmem:[%s223_s24] sm:$0xff] %v673_v10 }
 0x17f   : > { %918 = shalt.err (!%p915_p5)
}
 0x180   : > { %s919_s5 = scalar_lea.hbm %s687_s28, 128  ;;  %s923_s9 = scalar_lea.hbm %s1149_s3, 256 }
 0x181   : > { %p920_p7 = scmp.ne.s32.totalorder %s687_s28, %s919_s5  ;;  %p924_p12 = scmp.lt.s32.totalorder %s687_s28, %s1149_s3 }
 0x182   : > { %p925_p13 = scmp.lt.s32.totalorder %s923_s9, %s919_s5 }
 0x183   : > { %p921_p10 = pnand %p920_p7, %p1032_p6 }
 0x184   : > { %p926_p0 = por %p925_p13, %p924_p12 }
 0x185   : > { %p922_p11 = pneg %p921_p10 }
 0x187   : > { %p927_p9 = pnand %p926_p0, %p922_p11 }
 0x189   : > { %930 = shalt.err (!%p927_p9)
}
 0x18a   : > { %858 = dma.vmem_to_hbm [thread:$0]  (%p1032_p6), %s690_s25, 128, %s687_s28, %s676_s29  }
 0x18b PF: > { %s701_s17 = sand.u32 1, %s953_s12   ;;  %p1153_p1 = scmp.ge.s32.totalorder %s965_s15, 2 }
 0x18c   : > { %s702_s19 = scalar_lea.sflag [#allocation4], %s701_s17 }
 0x18d   : > { %p861_p2 = pnand %p1153_p1, %p1036_p8 }
 0x18f   : > { %p862_p3 = pneg %p861_p2 }
 0x191   : > { %948 = dma.done.wait (%p862_p3), %s702_s19, 128  }
 0x192   : > { %950 = vsyncadd (%p862_p3), %s702_s19, 4294967168  ;;  %p13_p9 = scmp.ge.s32.totalorder %s1017_s18, 4   ;;  %s1154_s12 = smov %s957_s13 }
 0x193   : > { %s1155_s13 = smov %s961_s14  ;;  %s1156_s14 = smov %s1030_s21 }
 0x194   : > { %s1157_s15 = smov %s1017_s18  ;;  %15 = sbr.rel (!%p13_p9) target bundleno = 3 (0x3), region = 124 }
 0x199   :  { %707 = vsyncpa [#allocation4], 1 }
 0x19a   :  { %709 = vsyncpa [#allocation4 + $0x1], 1 }

</bundles_post_ra>
